<compile_context>
chip_gen: v5e
topology: v5e:2x2
jax: 0.10.0
libtpu: 0.0.40
codegen_flags: <defaults>
</compile_context>

<pallas_src>
import functools
import math

import jax
import jax.numpy as jnp
from jax.experimental import pallas as pl
from jax.experimental.pallas import tpu as pltpu


# ----------------------------- Pallas kernel --------------------------------

def _joiner_kernel(src_ref, tgt_ref, w_ref, b_ref, o_ref, joint_ref, *, matmul_dtype):
    # grid = (B, T tiles, O tiles); the O axis is innermost and "arbitrary".
    # Build the joint tile once per (b, T-tile) and reuse it for every O tile.
    @pl.when(pl.program_id(2) == 0)
    def _():
        src = src_ref[0]                                   # (tt, D)  f32
        tgt = tgt_ref[0]                                   # (U,  D)  f32
        tt, D = src.shape
        U = tgt.shape[0]
        joint = jnp.maximum(src[:, None, :] + tgt[None, :, :], 0.0)   # (tt, U, D) f32
        joint_ref[...] = joint.reshape(tt * U, D).astype(matmul_dtype)

    tt = src_ref.shape[1]
    U = tgt_ref.shape[1]
    y = jnp.dot(joint_ref[...], w_ref[...], preferred_element_type=jnp.float32)
    y = y + b_ref[...]                                     # (tt*U, o_tile) f32
    o_ref[0] = y.reshape(tt, U, -1).astype(o_ref.dtype)


# ----------------------------- tile planning --------------------------------

def _round_up(x, m):
    return (x + m - 1) // m * m


def _cdiv(a, b):
    return -(-a // b)


def _vmem_caps():
    """(physical VMEM per core, scoped vmem_limit_bytes to request)."""
    try:
        cap = int(pltpu.get_tpu_info().vmem_capacity_bytes)
    except Exception:
        cap = 64 * 1024 * 1024          # conservative fallback (v7x per-TensorCore VMEM)
    return cap, (cap * 3) // 4


def _choose_o_tile(O_pad, hint=None):
    if hint is not None:
        t = min(O_pad, _round_up(int(hint), 128))
        if O_pad % t == 0:
            return t
    if O_pad <= 512:
        return O_pad
    for cand in (512, 256, 128):
        if O_pad % cand == 0:
            return cand
    return 128


def _plan_t_tile(T, U_pad, D, o_tile, matmul_bytes, out_bytes, budget_bytes):
    """Largest T tile whose real VMEM working set fits the budget."""
    fixed = (2 * U_pad * D * 4                  # target block (f32), 2 pipeline buffers
             + 2 * D * o_tile * matmul_bytes    # weight block, 2 buffers
             + 2 * o_tile * 4)                  # bias block, 2 buffers
    per_row = (2 * D * 4                           # src rows (f32), 2 buffers
               + 2 * U_pad * o_tile * out_bytes    # output rows, 2 buffers
               + U_pad * D * matmul_bytes          # joint scratch rows
               + U_pad * max(D, o_tile) * 4)       # transient f32 intermediate rows
    avail = max(budget_bytes - fixed, 8 * per_row)
    tt = max(8, avail // per_row)
    if tt >= T:
        return T
    # round so tt * U_pad is a multiple of 256 (MXU M alignment) and tt of 8
    step = max(8, 256 // math.gcd(U_pad, 256))
    return min(T, max(step, (tt // step) * step))


# ------------------------------- wrapper -------------------------------------

def joiner_forward(source_encodings, source_lengths, target_encodings, target_lengths,
                   weight, bias, *, matmul_dtype=jnp.bfloat16, out_dtype=jnp.float32,
                   t_tile=None, o_tile=None, vmem_budget_bytes=None):
    """RNN-T joiner forward.

    source_encodings: (B, T, D), target_encodings: (B, U, D),
    weight: (D, O) (pre-transposed vs torch's (O, D)), bias: (O,).
    Returns (output (B, T, U, O) in out_dtype, source_lengths, target_lengths).
    """
    B, T, D = source_encodings.shape
    Bt, U, Dt = target_encodings.shape
    assert B == Bt and D == Dt
    Dw, O = weight.shape
    assert Dw == D and bias.shape == (O,)

    matmul_bytes = jnp.dtype(matmul_dtype).itemsize
    out_bytes = jnp.dtype(out_dtype).itemsize

    vmem_cap, vmem_limit = _vmem_caps()
    if vmem_budget_bytes is None:
        vmem_budget_bytes = (vmem_cap * 9) // 16    # ~72 MiB on v5e/v6e, ~36 MiB on v7x
    vmem_limit = max(vmem_limit, min(vmem_cap, vmem_budget_bytes + (8 << 20)))

    # Pad U to a multiple of 8 (free sublane-aligned reshapes) and O to a multiple of
    # 128 (lane-dense unmasked output stores); results are sliced back below.
    U_pad = _round_up(U, 8)
    O_pad = _round_up(O, 128)
    if U_pad != U:
        target_encodings = jnp.pad(target_encodings, ((0, 0), (0, U_pad - U), (0, 0)))
    if O_pad != O:
        weight = jnp.pad(weight, ((0, 0), (0, O_pad - O)))
        bias = jnp.pad(bias, ((0, O_pad - O),))

    o_tile = _choose_o_tile(O_pad, o_tile)
    if t_tile is None:
        t_tile = _plan_t_tile(T, U_pad, D, o_tile, matmul_bytes, out_bytes,
                              vmem_budget_bytes)
        # keep both v7x TensorCores busy: want >= 2 steps on the parallel axes
        while B * _cdiv(T, t_tile) < 2 and t_tile > 8:
            t_tile = max(8, ((t_tile // 2 + 7) // 8) * 8)
    else:
        t_tile = min(T, _round_up(max(int(t_tile), 1), 8))

    # Cast weight only if needed (pre-cast bf16 weights cost nothing per call).
    w_dev = weight if weight.dtype == matmul_dtype else weight.astype(matmul_dtype)
    b_dev = bias.reshape(1, O_pad).astype(jnp.float32)

    grid = (B, _cdiv(T, t_tile), O_pad // o_tile)

    flops = 2 * B * T * U_pad * D * O_pad
    bytes_accessed = (source_encodings.size * source_encodings.dtype.itemsize
                      + target_encodings.size * target_encodings.dtype.itemsize
                      + w_dev.size * matmul_bytes + b_dev.size * 4
                      + B * T * U_pad * O_pad * out_bytes)

    out = pl.pallas_call(
        functools.partial(_joiner_kernel, matmul_dtype=matmul_dtype),
        out_shape=jax.ShapeDtypeStruct((B, T, U_pad, O_pad), out_dtype),
        grid=grid,
        in_specs=[
            pl.BlockSpec((1, t_tile, D), lambda b, i, o: (b, i, 0)),   # source T tile
            pl.BlockSpec((1, U_pad, D), lambda b, i, o: (b, 0, 0)),    # target (per b)
            pl.BlockSpec((D, o_tile), lambda b, i, o: (0, o)),         # weight O tile
            pl.BlockSpec((1, o_tile), lambda b, i, o: (0, o)),         # bias O tile
        ],
        out_specs=pl.BlockSpec((1, t_tile, U_pad, o_tile),
                               lambda b, i, o: (b, i, 0, o)),
        scratch_shapes=[pltpu.VMEM((t_tile * U_pad, D), matmul_dtype)],
        compiler_params=pltpu.CompilerParams(
            dimension_semantics=("parallel", "parallel", "arbitrary"),
            vmem_limit_bytes=int(vmem_limit)),
        cost_estimate=pl.CostEstimate(flops=int(flops), transcendentals=0,
                                      bytes_accessed=int(bytes_accessed)),
    )(source_encodings, target_encodings, w_dev, b_dev)

    if U_pad != U or O_pad != O:
        out = out[:, :, :U, :O]
    return out, source_lengths, target_lengths


# --------------------------- pure-JAX reference ------------------------------

def _ref_joiner(src, tgt, w, b):
    joint = jnp.maximum(src[:, :, None, :] + tgt[:, None, :, :], 0.0)
    return joint @ w + b


# ---------------------------------- demo -------------------------------------

if __name__ == "__main__":
    key = jax.random.PRNGKey(0)
    k_s, k_t, k_w, k_b = jax.random.split(key, 4)

    # Small but deliberately "awkward" shapes: U not a multiple of 8 and O not a
    # multiple of 128, so the padding + slice-back paths are exercised.
    B, T, U, D, O = 2, 16, 6, 64, 200
    src = jax.random.normal(k_s, (B, T, D), jnp.float32)
    tgt = jax.random.normal(k_t, (B, U, D), jnp.float32)
    weight = (0.05 * jax.random.normal(k_w, (D, O))).astype(jnp.float32)
    bias = (0.02 * jax.random.normal(k_b, (O,))).astype(jnp.float32)
    source_lengths = jnp.array([T, T - 3], jnp.int32)
    target_lengths = jnp.array([U, U - 2], jnp.int32)

    ref = _ref_joiner(src, tgt, weight, bias)

    # f32 MXU path with auto tiling: tight check against the pure-JAX reference.
    fwd_f32 = jax.jit(functools.partial(joiner_forward, matmul_dtype=jnp.float32))
    out, out_src_len, out_tgt_len = fwd_f32(
        src, source_lengths, tgt, target_lengths, weight, bias)
    jax.block_until_ready(out)

    assert out.shape == (B, T, U, O)
    assert jnp.array_equal(out_src_len, source_lengths)
    assert jnp.array_equal(out_tgt_len, target_lengths)
    err_f32 = float(jnp.max(jnp.abs(out - ref)))
    assert err_f32 < 1e-3, f"f32 kernel mismatch vs reference: {err_f32}"

    # bf16-operand MXU path (default) with explicit small tiles so the full
    # (B x T-tiles x O-tiles) grid and the joint-scratch reuse across O tiles are
    # exercised.  Weight pre-cast once (hoisted out of the forward call).
    weight_bf16 = weight.astype(jnp.bfloat16)
    fwd_bf16 = jax.jit(functools.partial(
        joiner_forward, matmul_dtype=jnp.bfloat16, t_tile=8, o_tile=128))
    out_bf16, _, _ = fwd_bf16(
        src, source_lengths, tgt, target_lengths, weight_bf16, bias)
    jax.block_until_ready(out_bf16)
    err_bf16 = float(jnp.max(jnp.abs(out_bf16 - ref)))
    assert err_bf16 < 1e-1, f"bf16 kernel mismatch vs reference: {err_bf16}"

    print("KERNEL_OK")
</pallas_src>

<mosaic_0001>
module attributes {stable_mosaic.version = 11 : i64} {
  func.func @_joiner_kernel(%arg0: i32, %arg1: i32, %arg2: i32, %arg3: memref<1x16x64xf32, #tpu.memory_space<vmem>>, %arg4: memref<1x8x64xf32, #tpu.memory_space<vmem>>, %arg5: memref<64x256xf32, #tpu.memory_space<vmem>>, %arg6: memref<1x256xf32, #tpu.memory_space<vmem>>, %arg7: memref<1x16x8x256xf32, #tpu.memory_space<vmem>>, %arg8: memref<128x64xf32, #tpu.memory_space<vmem>>) attributes {dimension_semantics = [#tpu.dimension_semantics<parallel>, #tpu.dimension_semantics<parallel>, #tpu.dimension_semantics<arbitrary>], iteration_bounds = array<i64: 2, 1, 1>, scalar_prefetch = 0 : i64, scratch_operands = 1 : i64, tpu.core_type = #tpu.core_type<tc>, window_params = [{transform_indices = @transform_0, window_bounds = array<i64: 1, 16, 64>}, {transform_indices = @transform_1, window_bounds = array<i64: 1, 8, 64>}, {transform_indices = @transform_2, window_bounds = array<i64: 64, 256>}, {transform_indices = @transform_3, window_bounds = array<i64: 1, 256>}, {transform_indices = @transform_4, window_bounds = array<i64: 1, 16, 8, 256>}]} {
    %c0_i32 = arith.constant 0 : i32
    %0 = arith.cmpi eq, %arg2, %c0_i32 : i32
    %1 = arith.extui %0 : i1 to i32
    %c0_i32_0 = arith.constant 0 : i32
    %2 = arith.cmpi ne, %1, %c0_i32_0 : i32
    scf.if %2 {
      %c0_10 = arith.constant 0 : index
      %c0_11 = arith.constant 0 : index
      %c0_12 = arith.constant 0 : index
      %13 = vector.load %arg3[%c0_10, %c0_11, %c0_12] : memref<1x16x64xf32, #tpu.memory_space<vmem>>, vector<1x16x64xf32>
      %14 = vector.shape_cast %13 : vector<1x16x64xf32> to vector<16x64xf32>
      %c0_13 = arith.constant 0 : index
      %c0_14 = arith.constant 0 : index
      %c0_15 = arith.constant 0 : index
      %15 = vector.load %arg4[%c0_13, %c0_14, %c0_15] : memref<1x8x64xf32, #tpu.memory_space<vmem>>, vector<1x8x64xf32>
      %16 = vector.shape_cast %15 : vector<1x8x64xf32> to vector<8x64xf32>
      %17 = vector.shape_cast %14 : vector<16x64xf32> to vector<16x1x64xf32>
      %18 = vector.shape_cast %16 : vector<8x64xf32> to vector<1x8x64xf32>
      %19 = vector.broadcast %17 : vector<16x1x64xf32> to vector<16x8x64xf32>
      %20 = vector.broadcast %18 : vector<1x8x64xf32> to vector<16x8x64xf32>
      %21 = arith.addf %19, %20 : vector<16x8x64xf32>
      %cst_16 = arith.constant 0.000000e+00 : f32
      %22 = vector.broadcast %cst_16 : f32 to vector<16x8x64xf32>
      %23 = arith.maximumf %21, %22 : vector<16x8x64xf32>
      %24 = vector.shape_cast %23 : vector<16x8x64xf32> to vector<128x64xf32>
      %c0_17 = arith.constant 0 : index
      %c0_18 = arith.constant 0 : index
      %25 = vector.load %arg8[%c0_17, %c0_18] : memref<128x64xf32, #tpu.memory_space<vmem>>, vector<128x64xf32>
      tpu.vector_store %arg8[%c0_17, %c0_18], %24 {strides = array<i32>} : memref<128x64xf32, #tpu.memory_space<vmem>>, vector<128x64xf32>,
    } else {
    }
    %c0 = arith.constant 0 : index
    %c0_1 = arith.constant 0 : index
    %3 = vector.load %arg8[%c0, %c0_1] : memref<128x64xf32, #tpu.memory_space<vmem>>, vector<128x64xf32>
    %c0_2 = arith.constant 0 : index
    %c0_3 = arith.constant 0 : index
    %4 = vector.load %arg5[%c0_2, %c0_3] : memref<64x256xf32, #tpu.memory_space<vmem>>, vector<64x256xf32>
    %cst = arith.constant dense<0.000000e+00> : vector<128x256xf32>
    %5 = tpu.matmul %3, %4, %cst {dimension_numbers = #tpu.dot_dimension_numbers<[1], [0], [0], [1], [0, 0, 1, 1], [], []>} : vector<128x64xf32>, vector<64x256xf32>, vector<128x256xf32> -> vector<128x256xf32>
    %c0_4 = arith.constant 0 : index
    %c0_5 = arith.constant 0 : index
    %6 = vector.load %arg6[%c0_4, %c0_5] : memref<1x256xf32, #tpu.memory_space<vmem>>, vector<1x256xf32>
    %7 = vector.broadcast %6 : vector<1x256xf32> to vector<128x256xf32>
    %8 = arith.addf %5, %7 : vector<128x256xf32>
    %9 = vector.shape_cast %8 : vector<128x256xf32> to vector<16x8x256xf32>
    %c0_6 = arith.constant 0 : index
    %c0_7 = arith.constant 0 : index
    %c0_8 = arith.constant 0 : index
    %c0_9 = arith.constant 0 : index
    %10 = vector.load %arg7[%c0_6, %c0_7, %c0_8, %c0_9] : memref<1x16x8x256xf32, #tpu.memory_space<vmem>>, vector<1x16x8x256xf32>
    %11 = vector.shape_cast %10 : vector<1x16x8x256xf32> to vector<16x8x256xf32>
    %12 = vector.shape_cast %9 : vector<16x8x256xf32> to vector<1x16x8x256xf32>
    tpu.vector_store %arg7[%c0_6, %c0_7, %c0_8, %c0_9], %12 {strides = array<i32>} : memref<1x16x8x256xf32, #tpu.memory_space<vmem>>, vector<1x16x8x256xf32>,
    return
  }
  func.func @transform_0(%arg0: i32, %arg1: i32, %arg2: i32) -> (i32, i32, i32) {
    %c0_i32 = arith.constant 0 : i32
    %c0_i32_0 = arith.constant 0 : i32
    return %arg0, %arg1, %c0_i32 : i32, i32, i32
  }
  func.func @transform_1(%arg0: i32, %arg1: i32, %arg2: i32) -> (i32, i32, i32) {
    %c0_i32 = arith.constant 0 : i32
    %c0_i32_0 = arith.constant 0 : i32
    %c0_i32_1 = arith.constant 0 : i32
    return %arg0, %c0_i32, %c0_i32_0 : i32, i32, i32
  }
  func.func @transform_2(%arg0: i32, %arg1: i32, %arg2: i32) -> (i32, i32) {
    %c0_i32 = arith.constant 0 : i32
    %c0_i32_0 = arith.constant 0 : i32
    return %c0_i32, %arg2 : i32, i32
  }
  func.func @transform_3(%arg0: i32, %arg1: i32, %arg2: i32) -> (i32, i32) {
    %c0_i32 = arith.constant 0 : i32
    %c0_i32_0 = arith.constant 0 : i32
    return %c0_i32, %arg2 : i32, i32
  }
  func.func @transform_4(%arg0: i32, %arg1: i32, %arg2: i32) -> (i32, i32, i32, i32) {
    %c0_i32 = arith.constant 0 : i32
    %c0_i32_0 = arith.constant 0 : i32
    return %arg0, %arg1, %c0_i32, %arg2 : i32, i32, i32, i32
  }
}

</mosaic_0001>

<bundles_post_ra>
// kernel: joiner_forward.1
= control target key start
LH: loop header
LB: loop body
LE: loop exit
PB: predicated region body
PF: predicated region fallthrough
CT: control target
= control target key end

     0   :  { %s953_s15 = smov 0   ;;  %s955_s16 = smov 0   ;;  %s1201_s0 = inlined_call_operand.vmem [shape: f32[2,16,64], index: 0, kind: input, shape index: {}]   ;;  %s1202_s1 = inlined_call_operand.vmem [shape: f32[2,8,64], index: 1, kind: input, shape index: {}]   ;;  %s1203_s2 = inlined_call_operand.vmem [shape: f32[64,256], index: 2, kind: input, shape index: {}]   ;;  %s1204_s3 = inlined_call_operand.vmem [shape: f32[1,256], index: 3, kind: input, shape index: {}]   ;;  %s1205_s4 = inlined_call_operand.vmem [shape: f32[2,16,8,256], index: 4, kind: output, shape index: {}]  }
   0x1   :  { %s957_s17 = smov 0  }
   0x2 LB: > { %s33_s18 = sadd.s32 1, %s922_s16  ;;  %p822_p0 = scmp.ge.s32.totalorder %s926_s17, 1  ;;  %s926_s17 = sphi %s957_s17, %s14_s17   ;;  %s922_s16 = sphi %s955_s16, %s1207_s16   ;;  %s918_s15 = sphi %s953_s15, %s1206_s15  }
   0x3   : > { %p35_p1 = scmp.ge.s32.totalorder %s33_s18, 2  ;;  %p222_p2 = scmp.lt.s32.totalorder %s926_s17, 3 }
   0x5   : > { %s1209_s18 = smov (%p35_p1, %s33_s18), 0  ;;  %p223_p3 = pnand %p822_p0, %p222_p2 }
   0x6   : > { %p275_p4 = scmp.lt.s32.totalorder (!%p223_p3), %s918_s15, 1 }
   0x7   : > { %226 = sbr.rel (%p223_p3) target bundleno = 222 (0xde), region = 36 }
   0xc   : > { %v449_v0 = vld [vmem:[%s1203_s2 + $0x70] sm:$0xff]  ;;  %v450_v1 = vld [vmem:[%s1203_s2 + $0x78] sm:$0xff]  ;;  %v447_v2 = vld [vmem:[%s1203_s2 + $0x60] sm:$0xff]  ;;  %s1211_s15 = smov (!%p275_p4, %s918_s15), 1  ;;  %vm402_vm0 = vcmask 523264  }
   0xd   : > { %864 = vmatpush.msra.mxu2 %v449_v0  ;;  %872 = vmatpush.msra.mxu3 %v450_v1  ;;  %v448_v3 = vld [vmem:[%s1203_s2 + $0x68] sm:$0xff]  ;;  %v445_v4 = vld [vmem:[%s1203_s2 + $0x50] sm:$0xff]  ;;  %v446_v5 = vld [vmem:[%s1203_s2 + $0x58] sm:$0xff]  ;;  %s862_s9 = sshll.u32 %s1211_s15, 4  ;;  %s825_s10 = sshll.u32 %s1211_s15, 3 }
   0xe   : > { %514 = vmatpush.msra.mxu0 %v449_v0  ;;  %579 = vmatpush.msra.mxu1 %v450_v1  ;;  %v443_v6 = vld [vmem:[%s1203_s2 + $0x40] sm:$0xff]  ;;  %v444_v7 = vld [vmem:[%s1203_s2 + $0x48] sm:$0xff]  ;;  %v441_v8 = vld [vmem:[%s1203_s2 + $0x30] sm:$0xff]  ;;  %s282_s21 = scalar_lea.vmem %s1201_s0, %s862_s9  ;;  %s287_s24 = scalar_lea.vmem %s1202_s1, %s825_s10 }
   0xf   : > { %865 = vmatpush.msra.mxu2 %v447_v2  ;;  %873 = vmatpush.msra.mxu3 %v448_v3  ;;  %v442_v9 = vld [vmem:[%s1203_s2 + $0x38] sm:$0xff]  ;;  %v1011_v10 = vld [vmem:[%s282_s21 + $0x8] sm:$0xff]  ;;  %v1013_v11 = vld [vmem:[%s287_s24] sm:$0xff]  ;;  %s863_s13 = sshll.u32 %s1211_s15, 8 }
  0x10   : > { %515 = vmatpush.msra.mxu0 %v447_v2  ;;  %580 = vmatpush.msra.mxu1 %v448_v3  ;;  %v1015_v12 = vld [vmem:[%s282_s21] sm:$0xff]  ;;  %v346_v13 = vperm.slane %v1011_v10, 0  ;;  %v331_v15 = vrot.slane %v1011_v10, 1  ;;  %v440_v18 = vld [vmem:[%s1203_s2 + $0x28] sm:$0xff]  ;;  %v332_v19 = vrot.slane %v1011_v10, 2  ;;  %v333_v21 = vrot.slane %v1011_v10, 3  ;;  %s1126_s20 = scalar_lea.vmem %s1205_s4, %s863_s13 }
  0x11   : > { %866 = vmatpush.msra.mxu2 %v445_v4  ;;  %874 = vmatpush.msra.mxu3 %v446_v5  ;;  %v338_v14 = vperm.slane %v1015_v12, 0  ;;  %v324_v16 = vrot.slane %v1015_v12, 1  ;;  %v439_v17 = vld [vmem:[%s1203_s2 + $0x20] sm:$0xff]  ;;  %v325_v20 = vrot.slane %v1015_v12, 2  ;;  %v326_v22 = vrot.slane %v1015_v12, 3  ;;  %v437_v27 = vld [vmem:[%s1203_s2 + $0x10] sm:$0xff] }
  0x12   : > { %516 = vmatpush.msra.mxu0 %v445_v4  ;;  %581 = vmatpush.msra.mxu1 %v446_v5  ;;  %v378_v23 = vadd.f32 %v346_v13, %v1013_v11  ;;  %v347_v25 = vperm.slane %v331_v15, 0  ;;  %v438_v28 = vld [vmem:[%s1203_s2 + $0x18] sm:$0xff]  ;;  %v348_v29 = vperm.slane %v332_v19, 0  ;;  %v349_v31 = vperm.slane %v333_v21, 0  ;;  %v435_v37 = vld [vmem:[%s1203_s2] sm:$0xff]  ;;  %v436_v38 = vld [vmem:[%s1203_s2 + $0x8] sm:$0xff] }
  0x13   : > { %867 = vmatpush.msra.mxu2 %v443_v6  ;;  %875 = vmatpush.msra.mxu3 %v444_v7  ;;  %v370_v24 = vadd.f32 %v338_v14, %v1013_v11  ;;  %v339_v26 = vperm.slane %v324_v16, 0  ;;  %v340_v30 = vperm.slane %v325_v20, 0  ;;  %v341_v32 = vperm.slane %v326_v22, 0 }
  0x14   : > { %517 = vmatpush.msra.mxu0 %v443_v6  ;;  %582 = vmatpush.msra.mxu1 %v444_v7  ;;  %v394_v33 = vmax.f32 %v378_v23, 0.0  ;;  %v379_v35 = vadd.f32 %v347_v25, %v1013_v11  ;;  %v380_v39 = vadd.f32 %v348_v29, %v1013_v11  ;;  %v381_v41 = vadd.f32 %v349_v31, %v1013_v11 }
  0x15   : > { %868 = vmatpush.msra.mxu2 %v441_v8  ;;  %876 = vmatpush.msra.mxu3 %v442_v9  ;;  %v386_v34 = vmax.f32 %v370_v24, 0.0  ;;  %v371_v36 = vadd.f32 %v339_v26, %v1013_v11  ;;  %v372_v40 = vadd.f32 %v340_v30, %v1013_v11  ;;  %v334_v42 = vrot.slane %v1011_v10, 4 }
  0x16   : > { %518 = vmatpush.msra.mxu0 %v441_v8  ;;  %583 = vmatpush.msra.mxu1 %v442_v9  ;;  %411 = vst.msk [vmem:[#allocation2 + $0x40] sm:$0xff] %vm402_vm0, %v394_v33  ;;  %v395_v43 = vmax.f32 %v379_v35, 0.0  ;;  %v373_v45 = vadd.f32 %v341_v32, %v1013_v11  ;;  %v327_v46 = vrot.slane %v1015_v12, 4  ;;  %v396_v47 = vmax.f32 %v380_v39, 0.0  ;;  %v451_v33 = vld [vmem:[%s1204_s3] sm:$0x3] }
  0x17   : > { %869 = vmatpush.msra.mxu2 %v439_v17  ;;  %877 = vmatpush.msra.mxu3 %v440_v18  ;;  %v387_v44 = vmax.f32 %v371_v36, 0.0  ;;  %403 = vst.msk [vmem:[#allocation2] sm:$0xff] %vm402_vm0, %v386_v34  ;;  %v388_v48 = vmax.f32 %v372_v40, 0.0  ;;  %v350_v49 = vperm.slane %v334_v42, 0  ;;  %v397_v50 = vmax.f32 %v381_v41, 0.0 }
  0x18   : > { %519 = vmatpush.msra.mxu0 %v439_v17  ;;  %584 = vmatpush.msra.mxu1 %v440_v18  ;;  %412 = vst.msk [vmem:[#allocation2 + $0x48] sm:$0xff] %vm402_vm0, %v395_v43  ;;  %v342_v51 = vperm.slane %v327_v46, 0  ;;  %v335_v52 = vrot.slane %v1011_v10, 5  ;;  %v389_v53 = vmax.f32 %v373_v45, 0.0  ;;  %v328_v60 = vrot.slane %v1015_v12, 5 }
  0x19   : > { %870 = vmatpush.msra.mxu2 %v437_v27  ;;  %878 = vmatpush.msra.mxu3 %v438_v28  ;;  %404 = vst.msk [vmem:[#allocation2 + $0x8] sm:$0xff] %vm402_vm0, %v387_v44  ;;  %v382_v54 = vadd.f32 %v350_v49, %v1013_v11  ;;  %v336_v1 = vrot.slane %v1011_v10, 6  ;;  %v329_v9 = vrot.slane %v1015_v12, 6  ;;  %v337_v14 = vrot.slane %v1011_v10, 7 }
  0x1a   : > { %520 = vmatpush.msra.mxu0 %v437_v27  ;;  %585 = vmatpush.msra.mxu1 %v438_v28  ;;  %413 = vst.msk [vmem:[#allocation2 + $0x50] sm:$0xff] %vm402_vm0, %v396_v47  ;;  %v374_v55 = vadd.f32 %v342_v51, %v1013_v11  ;;  %v351_v56 = vperm.slane %v335_v52, 0  ;;  %v343_v0 = vperm.slane %v328_v60, 0  ;;  %v330_v22 = vrot.slane %v1015_v12, 7 }
  0x1b   : > { %871 = vmatpush.msra.mxu2 %v435_v37  ;;  %879 = vmatpush.msra.mxu3 %v436_v38  ;;  %405 = vst.msk [vmem:[#allocation2 + $0x10] sm:$0xff] %vm402_vm0, %v388_v48  ;;  %v398_v57 = vmax.f32 %v382_v54, 0.0  ;;  %v352_v3 = vperm.slane %v336_v1, 0  ;;  %v344_v13 = vperm.slane %v329_v9, 0  ;;  %v353_v16 = vperm.slane %v337_v14, 0 }
  0x1c   : > { %521 = vmatpush.msra.mxu0 %v435_v37  ;;  %586 = vmatpush.msra.mxu1 %v436_v38  ;;  %414 = vst.msk [vmem:[#allocation2 + $0x58] sm:$0xff] %vm402_vm0, %v397_v50  ;;  %v390_v58 = vmax.f32 %v374_v55, 0.0  ;;  %v383_v59 = vadd.f32 %v351_v56, %v1013_v11  ;;  %v375_v2 = vadd.f32 %v343_v0, %v1013_v11  ;;  %v345_v10 = vperm.slane %v330_v22, 0 }
  0x1d   : > { %v427_v61 = vld [vmem:[#allocation2 + $0x40] sm:$0xff]  ;;  %406 = vst.msk [vmem:[#allocation2 + $0x18] sm:$0xff] %vm402_vm0, %v389_v53  ;;  %v384_v5 = vadd.f32 %v352_v3, %v1013_v11  ;;  %v376_v15 = vadd.f32 %v344_v13, %v1013_v11  ;;  %v385_v18 = vadd.f32 %v353_v16, %v1013_v11  ;;  %v1119_v34 = vperm.slane %v451_v33, 0 }
  0x1e   : > { %836 = vmatmul.msk.f32.vlgmr.msra.gmra.mxu2 %vm402_vm0, %v427_v61  ;;  %852 = vmatmul.msk.f32.vlgmr.msra.gmra.mxu3 %vm402_vm0, %v427_v61  ;;  %v419_v62 = vld [vmem:[#allocation2] sm:$0xff]  ;;  %415 = vst.msk [vmem:[#allocation2 + $0x60] sm:$0xff] %vm402_vm0, %v398_v57  ;;  %v399_v63 = vmax.f32 %v383_v59, 0.0  ;;  %v391_v4 = vmax.f32 %v375_v2, 0.0  ;;  %v377_v23 = vadd.f32 %v345_v10, %v1013_v11  ;;  %v1121_v35 = vperm.slane %v451_v33, 1 }
  0x1f   : > { %828 = vmatmul.msk.f32.vlgmr.msra.gmra.mxu0 %vm402_vm0, %v419_v62  ;;  %844 = vmatmul.msk.f32.vlgmr.msra.gmra.mxu1 %vm402_vm0, %v419_v62  ;;  %407 = vst.msk [vmem:[#allocation2 + $0x20] sm:$0xff] %vm402_vm0, %v390_v58  ;;  %v428_v6 = vld [vmem:[#allocation2 + $0x48] sm:$0xff]  ;;  %v400_v8 = vmax.f32 %v384_v5, 0.0  ;;  %v392_v17 = vmax.f32 %v376_v15, 0.0  ;;  %v401_v21 = vmax.f32 %v385_v18, 0.0 }
  0x20   : > { %416 = vst.msk [vmem:[#allocation2 + $0x68] sm:$0xff] %vm402_vm0, %v399_v63  ;;  %v420_v7 = vld [vmem:[#allocation2 + $0x8] sm:$0xff]  ;;  %v393_v24 = vmax.f32 %v377_v23, 0.0 }
  0x21   : > { %408 = vst.msk [vmem:[#allocation2 + $0x28] sm:$0xff] %vm402_vm0, %v391_v4  ;;  %v429_v19 = vld [vmem:[#allocation2 + $0x50] sm:$0xff] }
  0x22   : > { %417 = vst.msk [vmem:[#allocation2 + $0x70] sm:$0xff] %vm402_vm0, %v400_v8  ;;  %v421_v20 = vld [vmem:[#allocation2 + $0x10] sm:$0xff] }
  0x23   : > { %409 = vst.msk [vmem:[#allocation2 + $0x30] sm:$0xff] %vm402_vm0, %v392_v17  ;;  %v430_v25 = vld [vmem:[#allocation2 + $0x58] sm:$0xff] }
  0x24   : > { %418 = vst.msk [vmem:[#allocation2 + $0x78] sm:$0xff] %vm402_vm0, %v401_v21  ;;  %v422_v26 = vld [vmem:[#allocation2 + $0x18] sm:$0xff] }
  0x25   : > { %410 = vst.msk [vmem:[#allocation2 + $0x38] sm:$0xff] %vm402_vm0, %v393_v24  ;;  %v431_v12 = vld [vmem:[#allocation2 + $0x60] sm:$0xff] }
  0x26   : > { %837 = vmatmul.msk.f32.gmra.mxu2 %vm402_vm0, %v428_v6  ;;  %853 = vmatmul.msk.f32.gmra.mxu3 %vm402_vm0, %v428_v6  ;;  %v423_v27 = vld [vmem:[#allocation2 + $0x20] sm:$0xff] }
  0x27   : > { %829 = vmatmul.msk.f32.gmra.mxu0 %vm402_vm0, %v420_v7  ;;  %845 = vmatmul.msk.f32.gmra.mxu1 %vm402_vm0, %v420_v7  ;;  %v432_v11 = vld [vmem:[#allocation2 + $0x68] sm:$0xff] }
  0x28   : > { %v424_v28 = vld [vmem:[#allocation2 + $0x28] sm:$0xff] }
  0x29   : > { %v433_v29 = vld [vmem:[#allocation2 + $0x70] sm:$0xff] }
  0x2a   : > { %v425_v30 = vld [vmem:[#allocation2 + $0x30] sm:$0xff] }
  0x2b   : > { %v434_v31 = vld [vmem:[#allocation2 + $0x78] sm:$0xff] }
  0x2c   : > { %v426_v32 = vld [vmem:[#allocation2 + $0x38] sm:$0xff] }
  0x2e   : > { %838 = vmatmul.msk.f32.gmra.mxu2 %vm402_vm0, %v429_v19  ;;  %854 = vmatmul.msk.f32.gmra.mxu3 %vm402_vm0, %v429_v19 }
  0x2f   : > { %830 = vmatmul.msk.f32.gmra.mxu0 %vm402_vm0, %v421_v20  ;;  %846 = vmatmul.msk.f32.gmra.mxu1 %vm402_vm0, %v421_v20 }
  0x36   : > { %839 = vmatmul.msk.f32.gmra.mxu2 %vm402_vm0, %v430_v25  ;;  %855 = vmatmul.msk.f32.gmra.mxu3 %vm402_vm0, %v430_v25 }
  0x37   : > { %831 = vmatmul.msk.f32.gmra.mxu0 %vm402_vm0, %v422_v26  ;;  %847 = vmatmul.msk.f32.gmra.mxu1 %vm402_vm0, %v422_v26 }
  0x3e   : > { %840 = vmatmul.msk.f32.gmra.mxu2 %vm402_vm0, %v431_v12  ;;  %856 = vmatmul.msk.f32.gmra.mxu3 %vm402_vm0, %v431_v12 }
  0x3f   : > { %832 = vmatmul.msk.f32.gmra.mxu0 %vm402_vm0, %v423_v27  ;;  %848 = vmatmul.msk.f32.gmra.mxu1 %vm402_vm0, %v423_v27 }
  0x46   : > { %841 = vmatmul.msk.f32.gmra.mxu2 %vm402_vm0, %v432_v11  ;;  %857 = vmatmul.msk.f32.gmra.mxu3 %vm402_vm0, %v432_v11 }
  0x47   : > { %833 = vmatmul.msk.f32.gmra.mxu0 %vm402_vm0, %v424_v28  ;;  %849 = vmatmul.msk.f32.gmra.mxu1 %vm402_vm0, %v424_v28 }
  0x4e   : > { %842 = vmatmul.msk.f32.gmra.mxu2 %vm402_vm0, %v433_v29  ;;  %858 = vmatmul.msk.f32.gmra.mxu3 %vm402_vm0, %v433_v29 }
  0x4f   : > { %834 = vmatmul.msk.f32.gmra.mxu0 %vm402_vm0, %v425_v30  ;;  %850 = vmatmul.msk.f32.gmra.mxu1 %vm402_vm0, %v425_v30 }
  0x56   : > { %843 = vmatmul.msk.f32.gmra.mxu2 %vm402_vm0, %v434_v31  ;;  %859 = vmatmul.msk.f32.gmra.mxu3 %vm402_vm0, %v434_v31 }
  0x57   : > { %835 = vmatmul.msk.f32.gmra.mxu0 %vm402_vm0, %v426_v32  ;;  %851 = vmatmul.msk.f32.gmra.mxu1 %vm402_vm0, %v426_v32 }
  0x9c   : > { %v523_v36 = vpop.f32.mrf.mxu0  ;;  %v588_v37 = vpop.f32.mrf.mxu1 }
  0x9d   : > { %v524_v38 = vadd.f32 %v523_v36, %v1119_v34  ;;  %v589_v39 = vadd.f32 %v588_v37, %v1121_v35 }
  0x9f   : > { %636 = vst [vmem:[%s1126_s20] sm:$0xff] %v524_v38 }
  0xa0   : > { %637 = vst [vmem:[%s1126_s20 + $0x8] sm:$0xff] %v589_v39 }
  0xa1   : > { %v547_v40 = vpop.f32.mrf.mxu2  ;;  %v612_v41 = vpop.f32.mrf.mxu3 }
  0xa2   : > { %v548_v42 = vadd.f32 %v547_v40, %v1119_v34  ;;  %v613_v43 = vadd.f32 %v612_v41, %v1121_v35 }
  0xa4   : > { %652 = vst [vmem:[%s1126_s20 + $0x80] sm:$0xff] %v548_v42  ;;  %v526_v44 = vpop.f32.mrf.mxu0  ;;  %v591_v45 = vpop.f32.mrf.mxu1 }
  0xa5   : > { %653 = vst [vmem:[%s1126_s20 + $0x88] sm:$0xff] %v613_v43  ;;  %v527_v46 = vadd.f32 %v526_v44, %v1119_v34  ;;  %v592_v47 = vadd.f32 %v591_v45, %v1121_v35 }
  0xa7   : > { %638 = vst [vmem:[%s1126_s20 + $0x10] sm:$0xff] %v527_v46 }
  0xa8   : > { %639 = vst [vmem:[%s1126_s20 + $0x18] sm:$0xff] %v592_v47 }
  0xa9   : > { %v550_v48 = vpop.f32.mrf.mxu2  ;;  %v615_v49 = vpop.f32.mrf.mxu3 }
  0xaa   : > { %v551_v50 = vadd.f32 %v550_v48, %v1119_v34  ;;  %v616_v51 = vadd.f32 %v615_v49, %v1121_v35 }
  0xac   : > { %654 = vst [vmem:[%s1126_s20 + $0x90] sm:$0xff] %v551_v50  ;;  %v529_v52 = vpop.f32.mrf.mxu0  ;;  %v594_v53 = vpop.f32.mrf.mxu1 }
  0xad   : > { %655 = vst [vmem:[%s1126_s20 + $0x98] sm:$0xff] %v616_v51  ;;  %v530_v54 = vadd.f32 %v529_v52, %v1119_v34  ;;  %v595_v55 = vadd.f32 %v594_v53, %v1121_v35 }
  0xaf   : > { %640 = vst [vmem:[%s1126_s20 + $0x20] sm:$0xff] %v530_v54 }
  0xb0   : > { %641 = vst [vmem:[%s1126_s20 + $0x28] sm:$0xff] %v595_v55 }
  0xb1   : > { %v553_v56 = vpop.f32.mrf.mxu2  ;;  %v618_v57 = vpop.f32.mrf.mxu3 }
  0xb2   : > { %v554_v58 = vadd.f32 %v553_v56, %v1119_v34  ;;  %v619_v59 = vadd.f32 %v618_v57, %v1121_v35 }
  0xb4   : > { %656 = vst [vmem:[%s1126_s20 + $0xa0] sm:$0xff] %v554_v58  ;;  %v532_v60 = vpop.f32.mrf.mxu0  ;;  %v597_v61 = vpop.f32.mrf.mxu1 }
  0xb5   : > { %657 = vst [vmem:[%s1126_s20 + $0xa8] sm:$0xff] %v619_v59  ;;  %v533_v62 = vadd.f32 %v532_v60, %v1119_v34  ;;  %v598_v63 = vadd.f32 %v597_v61, %v1121_v35 }
  0xb7   : > { %642 = vst [vmem:[%s1126_s20 + $0x30] sm:$0xff] %v533_v62 }
  0xb8   : > { %643 = vst [vmem:[%s1126_s20 + $0x38] sm:$0xff] %v598_v63 }
  0xb9   : > { %v556_v0 = vpop.f32.mrf.mxu2  ;;  %v621_v1 = vpop.f32.mrf.mxu3 }
  0xba   : > { %v557_v2 = vadd.f32 %v556_v0, %v1119_v34  ;;  %v622_v3 = vadd.f32 %v621_v1, %v1121_v35 }
  0xbc   : > { %658 = vst [vmem:[%s1126_s20 + $0xb0] sm:$0xff] %v557_v2  ;;  %v535_v4 = vpop.f32.mrf.mxu0  ;;  %v600_v5 = vpop.f32.mrf.mxu1 }
  0xbd   : > { %659 = vst [vmem:[%s1126_s20 + $0xb8] sm:$0xff] %v622_v3  ;;  %v536_v6 = vadd.f32 %v535_v4, %v1119_v34  ;;  %v601_v7 = vadd.f32 %v600_v5, %v1121_v35 }
  0xbf   : > { %644 = vst [vmem:[%s1126_s20 + $0x40] sm:$0xff] %v536_v6 }
  0xc0   : > { %645 = vst [vmem:[%s1126_s20 + $0x48] sm:$0xff] %v601_v7 }
  0xc1   : > { %v559_v8 = vpop.f32.mrf.mxu2  ;;  %v624_v9 = vpop.f32.mrf.mxu3 }
  0xc2   : > { %v560_v13 = vadd.f32 %v559_v8, %v1119_v34  ;;  %v625_v14 = vadd.f32 %v624_v9, %v1121_v35 }
  0xc4   : > { %660 = vst [vmem:[%s1126_s20 + $0xc0] sm:$0xff] %v560_v13  ;;  %v538_v15 = vpop.f32.mrf.mxu0  ;;  %v603_v16 = vpop.f32.mrf.mxu1 }
  0xc5   : > { %661 = vst [vmem:[%s1126_s20 + $0xc8] sm:$0xff] %v625_v14  ;;  %v539_v17 = vadd.f32 %v538_v15, %v1119_v34  ;;  %v604_v18 = vadd.f32 %v603_v16, %v1121_v35 }
  0xc7   : > { %646 = vst [vmem:[%s1126_s20 + $0x50] sm:$0xff] %v539_v17 }
  0xc8   : > { %647 = vst [vmem:[%s1126_s20 + $0x58] sm:$0xff] %v604_v18 }
  0xc9   : > { %v562_v19 = vpop.f32.mrf.mxu2  ;;  %v627_v20 = vpop.f32.mrf.mxu3 }
  0xca   : > { %v563_v21 = vadd.f32 %v562_v19, %v1119_v34  ;;  %v628_v22 = vadd.f32 %v627_v20, %v1121_v35 }
  0xcc   : > { %662 = vst [vmem:[%s1126_s20 + $0xd0] sm:$0xff] %v563_v21  ;;  %v541_v10 = vpop.f32.mrf.mxu0  ;;  %v606_v23 = vpop.f32.mrf.mxu1 }
  0xcd   : > { %663 = vst [vmem:[%s1126_s20 + $0xd8] sm:$0xff] %v628_v22  ;;  %v542_v24 = vadd.f32 %v541_v10, %v1119_v34  ;;  %v607_v25 = vadd.f32 %v606_v23, %v1121_v35 }
  0xcf   : > { %648 = vst [vmem:[%s1126_s20 + $0x60] sm:$0xff] %v542_v24 }
  0xd0   : > { %649 = vst [vmem:[%s1126_s20 + $0x68] sm:$0xff] %v607_v25 }
  0xd1   : > { %v565_v26 = vpop.f32.mrf.mxu2  ;;  %v630_v12 = vpop.f32.mrf.mxu3 }
  0xd2   : > { %v566_v27 = vadd.f32 %v565_v26, %v1119_v34  ;;  %v631_v11 = vadd.f32 %v630_v12, %v1121_v35 }
  0xd4   : > { %664 = vst [vmem:[%s1126_s20 + $0xe0] sm:$0xff] %v566_v27  ;;  %v544_v28 = vpop.f32.mrf.mxu0  ;;  %v609_v29 = vpop.f32.mrf.mxu1 }
  0xd5   : > { %665 = vst [vmem:[%s1126_s20 + $0xe8] sm:$0xff] %v631_v11  ;;  %v545_v30 = vadd.f32 %v544_v28, %v1119_v34  ;;  %v610_v31 = vadd.f32 %v609_v29, %v1121_v35 }
  0xd7   : > { %650 = vst [vmem:[%s1126_s20 + $0x70] sm:$0xff] %v545_v30 }
  0xd8   : > { %651 = vst [vmem:[%s1126_s20 + $0x78] sm:$0xff] %v610_v31 }
  0xd9   : > { %v568_v32 = vpop.f32.mrf.mxu2  ;;  %v633_v33 = vpop.f32.mrf.mxu3 }
  0xda   : > { %v569_v36 = vadd.f32 %v568_v32, %v1119_v34  ;;  %v634_v37 = vadd.f32 %v633_v33, %v1121_v35 }
  0xdc   : > { %666 = vst [vmem:[%s1126_s20 + $0xf0] sm:$0xff] %v569_v36 }
  0xdd   : > { %667 = vst [vmem:[%s1126_s20 + $0xf8] sm:$0xff] %v634_v37 }
  0xde PF: > { %s14_s17 = sadd.s32 1, %s926_s17   ;;  %s1206_s15 = smov %s922_s16 }
  0xdf   : > { %p11_p5 = scmp.ge.s32.totalorder %s14_s17, 4   ;;  %s1207_s16 = smov %s1209_s18 }
  0xe1   :  { %13 = sbr.rel (!%p11_p5) target bundleno = 2 (0x2), region = 79 }

</bundles_post_ra>
